<compile_context>
chip_gen: v7x
topology: tpu7x:2x2x1
jax: 0.10.0
libtpu: 0.0.40
codegen_flags: <defaults>
</compile_context>

<pallas_src>
import functools

import jax
import jax.numpy as jnp
from jax.experimental import pallas as pl
from jax.experimental.pallas import tpu as pltpu

SUB = 8            # sublanes per f32 vreg
LANE = 128         # lanes per vreg
UNIT = SUB * LANE  # minimum batch granule: one full vreg of batch elements per feature row


def _mlp_kernel(x_ref, w1_ref, b1_ref, w2_ref, b2_ref, o_ref):
    in_f, hid = w1_ref.shape          # (2, 4)
    out_f = w2_ref.shape[1]           # 2
    # x_ref: (in_f*SUB, TC) f32 in VMEM; feature i occupies sublane rows [i*SUB, (i+1)*SUB).
    x_rows = [x_ref[i * SUB:(i + 1) * SUB, :] for i in range(in_f)]   # each (SUB, TC)

    # Layer 1: Linear(2, 4) + ReLU, unrolled as scalar-broadcast VPU FMAs (weights from SMEM).
    h = []
    for j in range(hid):
        hj = x_rows[0] * w1_ref[0, j]
        for i in range(1, in_f):
            hj = hj + x_rows[i] * w1_ref[i, j]
        h.append(jnp.maximum(hj + b1_ref[0, j], 0.0))

    # Layer 2: Linear(4, 2), unrolled.
    logits = []
    for k in range(out_f):
        lk = h[0] * w2_ref[0, k]
        for j in range(1, hid):
            lk = lk + h[j] * w2_ref[j, k]
        logits.append(lk + b2_ref[0, k])

    # Softmax over the class axis. For 2 classes this is exactly a sigmoid: drops the max, one
    # exp, the sum and the reciprocal, and each row sums to exactly 1. Rows are stored directly
    # into o_ref slices (plain lane-dense stores, no sublane-axis concatenate).
    if out_f == 2:
        p0 = 1.0 / (1.0 + jnp.exp(logits[1] - logits[0]))
        o_ref[0 * SUB:1 * SUB, :] = p0.astype(o_ref.dtype)
        o_ref[1 * SUB:2 * SUB, :] = (1.0 - p0).astype(o_ref.dtype)
    else:  # generic exact softmax fallback (not taken for this module)
        m = functools.reduce(jnp.maximum, logits)
        exps = [jnp.exp(l - m) for l in logits]
        denom = functools.reduce(lambda a, b: a + b, exps)
        for k in range(out_f):
            o_ref[k * SUB:(k + 1) * SUB, :] = (exps[k] / denom).astype(o_ref.dtype)


def simple_nn_forward(x, w1, b1, w2, b2, *, tile_b=128 * 1024):
    """x: (B, 2) f32 -> (B, 2) f32 softmax probabilities. Matches SimpleNN.forward.

    Note: weights here are stored as (in_features, out_features); a PyTorch nn.Linear.weight is
    (out_features, in_features) and must be transposed before being passed in.
    """
    B = x.shape[0]
    in_f = w1.shape[0]
    out_f = w2.shape[1]

    # --- Tiling arithmetic (pad only to a vreg granule, not to a multiple of the tile). ---
    tile_b = max(UNIT, (tile_b // UNIT) * UNIT)           # tile = whole number of vregs
    b_pad = max(UNIT, ((B + UNIT - 1) // UNIT) * UNIT)    # pad batch to the 8x128 granule only
    n_tiles = pl.cdiv(b_pad, tile_b)
    if n_tiles == 1 and b_pad >= 16 * UNIT:
        n_tiles = 2                                       # keep both v7x TensorCores busy
    tb = ((pl.cdiv(b_pad, n_tiles) + UNIT - 1) // UNIT) * UNIT
    b_pad = tb * n_tiles                                  # adds at most n_tiles*UNIT extra pad
    cols = b_pad // SUB                                   # packed lane-axis length
    tc = tb // SUB                                        # packed columns per grid step (%128==0)

    # (B, in_f) -> lane-dense (in_f, b_pad) with zero tail padding, then sublane-pack to
    # (in_f*SUB, b_pad//SUB) so every tile uses all 8 sublanes as well as all 128 lanes.
    x_t = jnp.zeros((in_f, b_pad), jnp.float32).at[:, :B].set(x.T.astype(jnp.float32))
    x_p = x_t.reshape(in_f * SUB, cols)
    # TODO(synk): the wrapper-side (B,2)->(2,B) transpose/pad still costs extra HBM traffic in
    # XLA; fusing a lane-deinterleave of the natural (B,2) layout into the kernel would remove it.

    out_p = pl.pallas_call(
        _mlp_kernel,
        out_shape=jax.ShapeDtypeStruct((out_f * SUB, cols), jnp.float32),
        grid=(n_tiles,),
        in_specs=[
            pl.BlockSpec((in_f * SUB, tc), lambda i: (0, i)),                    # packed x tile
            pl.BlockSpec(w1.shape, lambda i: (0, 0), memory_space=pltpu.SMEM),   # w1 scalars
            pl.BlockSpec(b1.shape, lambda i: (0, 0), memory_space=pltpu.SMEM),   # b1 scalars
            pl.BlockSpec(w2.shape, lambda i: (0, 0), memory_space=pltpu.SMEM),   # w2 scalars
            pl.BlockSpec(b2.shape, lambda i: (0, 0), memory_space=pltpu.SMEM),   # b2 scalars
        ],
        out_specs=pl.BlockSpec((out_f * SUB, tc), lambda i: (0, i)),
        compiler_params=pltpu.CompilerParams(
            dimension_semantics=("parallel",),        # batch tiles shard across v7x's 2 TCs
            vmem_limit_bytes=48 * 1024 * 1024,        # headroom on v5e/v6e, < v7x's 64 MiB VMEM
        ),
    )(x_p, w1, b1, w2, b2)

    # Unpack: (out_f*SUB, cols) -> (out_f, b_pad) -> (B, out_f).
    return out_p.reshape(out_f, b_pad)[:, :B].T


def init_params(key):
    """Deterministic init mirroring nn.Linear defaults (uniform in +/- 1/sqrt(fan_in))."""
    k1, k2, k3, k4 = jax.random.split(key, 4)
    bound1 = 1.0 / jnp.sqrt(2.0)   # fan_in = 2
    bound2 = 1.0 / jnp.sqrt(4.0)   # fan_in = 4
    w1 = jax.random.uniform(k1, (2, 4), jnp.float32, -bound1, bound1)  # stored as (in, out)
    b1 = jax.random.uniform(k2, (1, 4), jnp.float32, -bound1, bound1)
    w2 = jax.random.uniform(k3, (4, 2), jnp.float32, -bound2, bound2)
    b2 = jax.random.uniform(k4, (1, 2), jnp.float32, -bound2, bound2)
    return w1, b1, w2, b2


if __name__ == "__main__":
    key = jax.random.PRNGKey(0)
    pkey, xkey1, xkey2 = jax.random.split(key, 3)
    w1, b1, w2, b2 = init_params(pkey)

    def ref_forward(xx):
        h = jnp.maximum(xx @ w1 + b1, 0.0)
        return jax.nn.softmax(h @ w2 + b2, axis=1)

    # Small case consistent with the PyTorch example (batch=2, features=2), including [[1., 2.]].
    x_small = jnp.concatenate(
        [jnp.array([[1.0, 2.0]], jnp.float32),
         jax.random.normal(xkey1, (1, 2), jnp.float32)], axis=0)
    out_small = jax.block_until_ready(simple_nn_forward(x_small, w1, b1, w2, b2))
    assert out_small.shape == (2, 2)
    assert jnp.allclose(out_small, ref_forward(x_small), atol=1e-5, rtol=1e-5)
    assert jnp.allclose(jnp.sum(out_small, axis=1), 1.0, atol=1e-5)

    # Larger, non-multiple-of-tile batch to exercise the multi-tile grid + tail-padding path.
    x_big = jax.random.normal(xkey2, (2500, 2), jnp.float32)
    out_big = jax.block_until_ready(simple_nn_forward(x_big, w1, b1, w2, b2, tile_b=1024))
    assert out_big.shape == (2500, 2)
    assert jnp.allclose(out_big, ref_forward(x_big), atol=1e-5, rtol=1e-5)
    assert jnp.allclose(jnp.sum(out_big, axis=1), 1.0, atol=1e-5)

    print("KERNEL_OK")
</pallas_src>

<mosaic_0001>
module attributes {stable_mosaic.version = 11 : i64} {
  func.func @_mlp_kernel(%arg0: i32, %arg1: memref<16x128xf32, #tpu.memory_space<vmem>>, %arg2: memref<2x4xf32, #tpu.memory_space<smem>>, %arg3: memref<1x4xf32, #tpu.memory_space<smem>>, %arg4: memref<4x2xf32, #tpu.memory_space<smem>>, %arg5: memref<1x2xf32, #tpu.memory_space<smem>>, %arg6: memref<16x128xf32, #tpu.memory_space<vmem>>) attributes {dimension_semantics = [#tpu.dimension_semantics<parallel>], iteration_bounds = array<i64: 1>, scalar_prefetch = 0 : i64, scratch_operands = 0 : i64, tpu.core_type = #tpu.core_type<tc>, window_params = [{transform_indices = @transform_0, window_bounds = array<i64: 16, 128>}, {transform_indices = @transform_1, window_bounds = array<i64: 2, 4>}, {transform_indices = @transform_2, window_bounds = array<i64: 1, 4>}, {transform_indices = @transform_3, window_bounds = array<i64: 4, 2>}, {transform_indices = @transform_4, window_bounds = array<i64: 1, 2>}, {transform_indices = @transform_5, window_bounds = array<i64: 16, 128>}]} {
    %c0 = arith.constant 0 : index
    %c0_0 = arith.constant 0 : index
    %0 = vector.load %arg1[%c0, %c0_0] : memref<16x128xf32, #tpu.memory_space<vmem>>, vector<8x128xf32>
    %c8 = arith.constant 8 : index
    %c0_1 = arith.constant 0 : index
    %1 = vector.load %arg1[%c8, %c0_1] : memref<16x128xf32, #tpu.memory_space<vmem>>, vector<8x128xf32>
    %c0_2 = arith.constant 0 : index
    %c0_3 = arith.constant 0 : index
    %2 = memref.load %arg2[%c0_2, %c0_3] : memref<2x4xf32, #tpu.memory_space<smem>>
    %3 = vector.broadcast %2 : f32 to vector<8x128xf32>
    %4 = arith.mulf %0, %3 : vector<8x128xf32>
    %c1 = arith.constant 1 : index
    %c0_4 = arith.constant 0 : index
    %5 = memref.load %arg2[%c1, %c0_4] : memref<2x4xf32, #tpu.memory_space<smem>>
    %6 = vector.broadcast %5 : f32 to vector<8x128xf32>
    %7 = arith.mulf %1, %6 : vector<8x128xf32>
    %8 = arith.addf %4, %7 : vector<8x128xf32>
    %c0_5 = arith.constant 0 : index
    %c0_6 = arith.constant 0 : index
    %9 = memref.load %arg3[%c0_5, %c0_6] : memref<1x4xf32, #tpu.memory_space<smem>>
    %10 = vector.broadcast %9 : f32 to vector<8x128xf32>
    %11 = arith.addf %8, %10 : vector<8x128xf32>
    %cst = arith.constant 0.000000e+00 : f32
    %12 = vector.broadcast %cst : f32 to vector<8x128xf32>
    %13 = arith.maximumf %11, %12 : vector<8x128xf32>
    %c0_7 = arith.constant 0 : index
    %c1_8 = arith.constant 1 : index
    %14 = memref.load %arg2[%c0_7, %c1_8] : memref<2x4xf32, #tpu.memory_space<smem>>
    %15 = vector.broadcast %14 : f32 to vector<8x128xf32>
    %16 = arith.mulf %0, %15 : vector<8x128xf32>
    %c1_9 = arith.constant 1 : index
    %c1_10 = arith.constant 1 : index
    %17 = memref.load %arg2[%c1_9, %c1_10] : memref<2x4xf32, #tpu.memory_space<smem>>
    %18 = vector.broadcast %17 : f32 to vector<8x128xf32>
    %19 = arith.mulf %1, %18 : vector<8x128xf32>
    %20 = arith.addf %16, %19 : vector<8x128xf32>
    %c0_11 = arith.constant 0 : index
    %c1_12 = arith.constant 1 : index
    %21 = memref.load %arg3[%c0_11, %c1_12] : memref<1x4xf32, #tpu.memory_space<smem>>
    %22 = vector.broadcast %21 : f32 to vector<8x128xf32>
    %23 = arith.addf %20, %22 : vector<8x128xf32>
    %cst_13 = arith.constant 0.000000e+00 : f32
    %24 = vector.broadcast %cst_13 : f32 to vector<8x128xf32>
    %25 = arith.maximumf %23, %24 : vector<8x128xf32>
    %c0_14 = arith.constant 0 : index
    %c2 = arith.constant 2 : index
    %26 = memref.load %arg2[%c0_14, %c2] : memref<2x4xf32, #tpu.memory_space<smem>>
    %27 = vector.broadcast %26 : f32 to vector<8x128xf32>
    %28 = arith.mulf %0, %27 : vector<8x128xf32>
    %c1_15 = arith.constant 1 : index
    %c2_16 = arith.constant 2 : index
    %29 = memref.load %arg2[%c1_15, %c2_16] : memref<2x4xf32, #tpu.memory_space<smem>>
    %30 = vector.broadcast %29 : f32 to vector<8x128xf32>
    %31 = arith.mulf %1, %30 : vector<8x128xf32>
    %32 = arith.addf %28, %31 : vector<8x128xf32>
    %c0_17 = arith.constant 0 : index
    %c2_18 = arith.constant 2 : index
    %33 = memref.load %arg3[%c0_17, %c2_18] : memref<1x4xf32, #tpu.memory_space<smem>>
    %34 = vector.broadcast %33 : f32 to vector<8x128xf32>
    %35 = arith.addf %32, %34 : vector<8x128xf32>
    %cst_19 = arith.constant 0.000000e+00 : f32
    %36 = vector.broadcast %cst_19 : f32 to vector<8x128xf32>
    %37 = arith.maximumf %35, %36 : vector<8x128xf32>
    %c0_20 = arith.constant 0 : index
    %c3 = arith.constant 3 : index
    %38 = memref.load %arg2[%c0_20, %c3] : memref<2x4xf32, #tpu.memory_space<smem>>
    %39 = vector.broadcast %38 : f32 to vector<8x128xf32>
    %40 = arith.mulf %0, %39 : vector<8x128xf32>
    %c1_21 = arith.constant 1 : index
    %c3_22 = arith.constant 3 : index
    %41 = memref.load %arg2[%c1_21, %c3_22] : memref<2x4xf32, #tpu.memory_space<smem>>
    %42 = vector.broadcast %41 : f32 to vector<8x128xf32>
    %43 = arith.mulf %1, %42 : vector<8x128xf32>
    %44 = arith.addf %40, %43 : vector<8x128xf32>
    %c0_23 = arith.constant 0 : index
    %c3_24 = arith.constant 3 : index
    %45 = memref.load %arg3[%c0_23, %c3_24] : memref<1x4xf32, #tpu.memory_space<smem>>
    %46 = vector.broadcast %45 : f32 to vector<8x128xf32>
    %47 = arith.addf %44, %46 : vector<8x128xf32>
    %cst_25 = arith.constant 0.000000e+00 : f32
    %48 = vector.broadcast %cst_25 : f32 to vector<8x128xf32>
    %49 = arith.maximumf %47, %48 : vector<8x128xf32>
    %c0_26 = arith.constant 0 : index
    %c0_27 = arith.constant 0 : index
    %50 = memref.load %arg4[%c0_26, %c0_27] : memref<4x2xf32, #tpu.memory_space<smem>>
    %51 = vector.broadcast %50 : f32 to vector<8x128xf32>
    %52 = arith.mulf %13, %51 : vector<8x128xf32>
    %c1_28 = arith.constant 1 : index
    %c0_29 = arith.constant 0 : index
    %53 = memref.load %arg4[%c1_28, %c0_29] : memref<4x2xf32, #tpu.memory_space<smem>>
    %54 = vector.broadcast %53 : f32 to vector<8x128xf32>
    %55 = arith.mulf %25, %54 : vector<8x128xf32>
    %56 = arith.addf %52, %55 : vector<8x128xf32>
    %c2_30 = arith.constant 2 : index
    %c0_31 = arith.constant 0 : index
    %57 = memref.load %arg4[%c2_30, %c0_31] : memref<4x2xf32, #tpu.memory_space<smem>>
    %58 = vector.broadcast %57 : f32 to vector<8x128xf32>
    %59 = arith.mulf %37, %58 : vector<8x128xf32>
    %60 = arith.addf %56, %59 : vector<8x128xf32>
    %c3_32 = arith.constant 3 : index
    %c0_33 = arith.constant 0 : index
    %61 = memref.load %arg4[%c3_32, %c0_33] : memref<4x2xf32, #tpu.memory_space<smem>>
    %62 = vector.broadcast %61 : f32 to vector<8x128xf32>
    %63 = arith.mulf %49, %62 : vector<8x128xf32>
    %64 = arith.addf %60, %63 : vector<8x128xf32>
    %c0_34 = arith.constant 0 : index
    %c0_35 = arith.constant 0 : index
    %65 = memref.load %arg5[%c0_34, %c0_35] : memref<1x2xf32, #tpu.memory_space<smem>>
    %66 = vector.broadcast %65 : f32 to vector<8x128xf32>
    %67 = arith.addf %64, %66 : vector<8x128xf32>
    %c0_36 = arith.constant 0 : index
    %c1_37 = arith.constant 1 : index
    %68 = memref.load %arg4[%c0_36, %c1_37] : memref<4x2xf32, #tpu.memory_space<smem>>
    %69 = vector.broadcast %68 : f32 to vector<8x128xf32>
    %70 = arith.mulf %13, %69 : vector<8x128xf32>
    %c1_38 = arith.constant 1 : index
    %c1_39 = arith.constant 1 : index
    %71 = memref.load %arg4[%c1_38, %c1_39] : memref<4x2xf32, #tpu.memory_space<smem>>
    %72 = vector.broadcast %71 : f32 to vector<8x128xf32>
    %73 = arith.mulf %25, %72 : vector<8x128xf32>
    %74 = arith.addf %70, %73 : vector<8x128xf32>
    %c2_40 = arith.constant 2 : index
    %c1_41 = arith.constant 1 : index
    %75 = memref.load %arg4[%c2_40, %c1_41] : memref<4x2xf32, #tpu.memory_space<smem>>
    %76 = vector.broadcast %75 : f32 to vector<8x128xf32>
    %77 = arith.mulf %37, %76 : vector<8x128xf32>
    %78 = arith.addf %74, %77 : vector<8x128xf32>
    %c3_42 = arith.constant 3 : index
    %c1_43 = arith.constant 1 : index
    %79 = memref.load %arg4[%c3_42, %c1_43] : memref<4x2xf32, #tpu.memory_space<smem>>
    %80 = vector.broadcast %79 : f32 to vector<8x128xf32>
    %81 = arith.mulf %49, %80 : vector<8x128xf32>
    %82 = arith.addf %78, %81 : vector<8x128xf32>
    %c0_44 = arith.constant 0 : index
    %c1_45 = arith.constant 1 : index
    %83 = memref.load %arg5[%c0_44, %c1_45] : memref<1x2xf32, #tpu.memory_space<smem>>
    %84 = vector.broadcast %83 : f32 to vector<8x128xf32>
    %85 = arith.addf %82, %84 : vector<8x128xf32>
    %86 = arith.subf %85, %67 : vector<8x128xf32>
    %87 = math.exp %86 : vector<8x128xf32>
    %cst_46 = arith.constant 1.000000e+00 : f32
    %88 = vector.broadcast %cst_46 : f32 to vector<8x128xf32>
    %89 = arith.addf %88, %87 : vector<8x128xf32>
    %cst_47 = arith.constant 1.000000e+00 : f32
    %90 = vector.broadcast %cst_47 : f32 to vector<8x128xf32>
    %91 = arith.divf %90, %89 : vector<8x128xf32>
    %c0_48 = arith.constant 0 : index
    %c0_49 = arith.constant 0 : index
    %92 = vector.load %arg6[%c0_48, %c0_49] : memref<16x128xf32, #tpu.memory_space<vmem>>, vector<8x128xf32>
    tpu.vector_store %arg6[%c0_48, %c0_49], %91 {strides = array<i32>} : memref<16x128xf32, #tpu.memory_space<vmem>>, vector<8x128xf32>,
    %cst_50 = arith.constant 1.000000e+00 : f32
    %93 = vector.broadcast %cst_50 : f32 to vector<8x128xf32>
    %94 = arith.subf %93, %91 : vector<8x128xf32>
    %c8_51 = arith.constant 8 : index
    %c0_52 = arith.constant 0 : index
    %95 = vector.load %arg6[%c8_51, %c0_52] : memref<16x128xf32, #tpu.memory_space<vmem>>, vector<8x128xf32>
    tpu.vector_store %arg6[%c8_51, %c0_52], %94 {strides = array<i32>} : memref<16x128xf32, #tpu.memory_space<vmem>>, vector<8x128xf32>,
    return
  }
  func.func @transform_0(%arg0: i32) -> (i32, i32) {
    %c0_i32 = arith.constant 0 : i32
    %c0_i32_0 = arith.constant 0 : i32
    return %c0_i32, %arg0 : i32, i32
  }
  func.func @transform_1(%arg0: i32) -> (i32, i32) {
    %c0_i32 = arith.constant 0 : i32
    %c0_i32_0 = arith.constant 0 : i32
    %c0_i32_1 = arith.constant 0 : i32
    return %c0_i32, %c0_i32_0 : i32, i32
  }
  func.func @transform_2(%arg0: i32) -> (i32, i32) {
    %c0_i32 = arith.constant 0 : i32
    %c0_i32_0 = arith.constant 0 : i32
    %c0_i32_1 = arith.constant 0 : i32
    return %c0_i32, %c0_i32_0 : i32, i32
  }
  func.func @transform_3(%arg0: i32) -> (i32, i32) {
    %c0_i32 = arith.constant 0 : i32
    %c0_i32_0 = arith.constant 0 : i32
    %c0_i32_1 = arith.constant 0 : i32
    return %c0_i32, %c0_i32_0 : i32, i32
  }
  func.func @transform_4(%arg0: i32) -> (i32, i32) {
    %c0_i32 = arith.constant 0 : i32
    %c0_i32_0 = arith.constant 0 : i32
    %c0_i32_1 = arith.constant 0 : i32
    return %c0_i32, %c0_i32_0 : i32, i32
  }
  func.func @transform_5(%arg0: i32) -> (i32, i32) {
    %c0_i32 = arith.constant 0 : i32
    %c0_i32_0 = arith.constant 0 : i32
    return %c0_i32, %arg0 : i32, i32
  }
}

</mosaic_0001>

<bundles_post_ra>
// kernel: tpu_custom_call.1
= control target key start
LH: loop header
LB: loop body
LE: loop exit
PB: predicated region body
PF: predicated region fallthrough
CT: control target
= control target key end

     0   :  { %10 = vsyncpa [#allocation3], 0  ;;  %s445_s0 = inlined_call_operand.hbm [shape: f32[16,128], index: 0, kind: input, shape index: {}]   ;;  %s446_s1 = inlined_call_operand.vmem [shape: f32[2,4], index: 1, kind: input, shape index: {}]   ;;  %s447_s2 = inlined_call_operand.vmem [shape: f32[1,4], index: 2, kind: input, shape index: {}]   ;;  %s448_s3 = inlined_call_operand.vmem [shape: f32[4,2], index: 3, kind: input, shape index: {}]   ;;  %s449_s4 = inlined_call_operand.vmem [shape: f32[1,2], index: 4, kind: input, shape index: {}]   ;;  %s450_s5 = inlined_call_operand.hbm [shape: f32[16,128], index: 5, kind: output, shape index: {}]  }
   0x1   :  { %11 = vsyncpa [#allocation5], 0 }
   0x2   :  { %12 = vsyncpa [#allocation8], 0 }
   0x3   :  { %13 = vsyncpa [#allocation11], 0  ;;  %s43_s20 = sshll.u32 %s447_s2, 4  ;;  %s44_s20 = int_to_ptr.vmem [resolvable:$true] %s43_s20 }
   0x4   :  { %14 = vsyncpa [#allocation4], 0  ;;  %s224_s21 = scalar_lea.vmem %s44_s20, 16  ;;  %p229_p1 = scmp.lt.s32.totalorder %s44_s20, %s44_s20 }
   0x5   :  { %p225_p0 = scmp.ne.s32.totalorder %s44_s20, %s224_s21  ;;  %p230_p2 = scmp.lt.s32.totalorder %s224_s21, %s224_s21 }
   0x7   :  { %p231_p3 = por %p230_p2, %p229_p1 }
   0x9   :  { %p232_p4 = pnand %p231_p3, %p225_p0 }
   0xb   :  { %235 = shalt.err (!%p232_p4)
}
   0xc   :  { %s326_s22 = smov [#allocation7]   ;;  %s327_s23 = smov [#allocation2]  }
   0xd   :  { %46 = dma.vmem_to_smem %s44_s20, 16, %s326_s22, [#allocation8]  }
   0xe   :  { %s20_s24 = sshll.u32 %s327_s23, 4  ;;  %s236_s27 = scalar_lea.hbm %s445_s0, 256  ;;  %s21_s24 = int_to_ptr.vmem [resolvable:$true] %s20_s24 }
   0xf   :  { %p237_p5 = scmp.ne.s32.totalorder %s445_s0, %s236_s27  ;;  %p240_p6 = scmp.lt.u32.totalorder %s236_s27, %s445_s0 }
  0x11   :  { %p242_p7 = pnand %p240_p6, %p237_p5 }
  0x13   :  { %245 = shalt.err (!%p242_p7)
}
  0x14   :  { %s246_s6 = scalar_lea.vmem %s21_s24, 256  ;;  %p251_p9 = scmp.lt.s32.totalorder %s21_s24, %s21_s24 }
  0x15   :  { %p247_p8 = scmp.ne.s32.totalorder %s21_s24, %s246_s6  ;;  %p252_p10 = scmp.lt.s32.totalorder %s246_s6, %s246_s6 }
  0x17   :  { %p253_p11 = por %p252_p10, %p251_p9 }
  0x19   :  { %p254_p12 = pnand %p253_p11, %p247_p8 }
  0x1b   :  { %257 = shalt.err (!%p254_p12)
}
  0x1c   :  { %s328_s7 = smov 128   ;;  %s329_s8 = smov 8  }
  0x1d   :  { %26 = dma.hbm_to_vmem [thread:$0]  %s445_s0, 256, %s21_s24, [#allocation3], %s328_s7, %s328_s7, %s329_s8  }
  0x1e   :  { %s33_s13 = sshll.u32 %s446_s1, 4  ;;  %s53_s16 = sshll.u32 %s448_s3, 4  ;;  %s34_s13 = int_to_ptr.vmem [resolvable:$true] %s33_s13  ;;  %s54_s16 = int_to_ptr.vmem [resolvable:$true] %s53_s16 }
  0x1f   :  { %s258_s17 = scalar_lea.vmem %s34_s13, 32  ;;  %p263_p0 = scmp.lt.s32.totalorder %s34_s13, %s34_s13 }
  0x20   :  { %p259_p13 = scmp.ne.s32.totalorder %s34_s13, %s258_s17  ;;  %p264_p1 = scmp.lt.s32.totalorder %s258_s17, %s258_s17 }
  0x22   :  { %p265_p2 = por %p264_p1, %p263_p0 }
  0x24   :  { %p266_p3 = pnand %p265_p2, %p259_p13 }
  0x26   :  { %269 = shalt.err (!%p266_p3)
}
  0x27   :  { %s330_s18 = smov [#allocation6]   ;;  %s270_s0 = scalar_lea.vmem %s54_s16, 64 }
  0x28   :  { %36 = dma.vmem_to_smem %s34_s13, 32, %s330_s18, [#allocation5]  }
  0x29   :  { %p271_p4 = scmp.ne.s32.totalorder %s54_s16, %s270_s0  ;;  %p275_p5 = scmp.lt.s32.totalorder %s54_s16, %s54_s16 }
  0x2a   :  { %p276_p6 = scmp.lt.s32.totalorder %s270_s0, %s270_s0 }
  0x2c   :  { %p277_p7 = por %p276_p6, %p275_p5 }
  0x2e   :  { %p278_p8 = pnand %p277_p7, %p271_p4 }
  0x30   :  { %281 = shalt.err (!%p278_p8)
}
  0x31   :  { %s331_s1 = smov [#allocation9]   ;;  %s63_s20 = sshll.u32 %s449_s4, 4  ;;  %s64_s20 = int_to_ptr.vmem [resolvable:$true] %s63_s20 }
  0x32   :  { %56 = dma.vmem_to_smem %s54_s16, 64, %s331_s1, [#allocation8]  }
  0x33   :  { %s282_s21 = scalar_lea.vmem %s64_s20, 16  ;;  %p287_p10 = scmp.lt.s32.totalorder %s64_s20, %s64_s20 }
  0x34   :  { %p283_p9 = scmp.ne.s32.totalorder %s64_s20, %s282_s21  ;;  %p288_p11 = scmp.lt.s32.totalorder %s282_s21, %s282_s21 }
  0x36   :  { %p289_p12 = por %p288_p11, %p287_p10 }
  0x38   :  { %p290_p13 = pnand %p289_p12, %p283_p9 }
  0x3a   :  { %293 = shalt.err (!%p290_p13)
}
  0x3b   :  { %s332_s22 = smov [#allocation10]  }
  0x3c   :  { %66 = dma.vmem_to_smem %s64_s20, 16, %s332_s22, [#allocation11]  }
  0x3d   :  { %316 = dma.done.wait [#allocation3], 256  }
  0x3e   :  { %317 = vsyncadd [#allocation3], 4294967040 }
  0x3f   :  { %318 = dma.done.wait [#allocation5], 32  }
  0x40   :  { %319 = vsyncadd [#allocation5], 4294967264 }
  0x41   :  { %320 = dma.done.wait [#allocation8], 80  }
  0x42   :  { %321 = vsyncadd [#allocation8], 4294967216 }
  0x43   :  { %322 = dma.done.wait [#allocation11], 16  }
  0x44   :  { %323 = vsyncadd [#allocation11], 4294967280 }
  0x45   :  { %82 = sfence }
  0x46   :  { %s85_s4 = sld [smem:[#allocation6]]  ;;  %s195_s25 = sld [smem:[#allocation6 + $0x1]]  ;;  %v83_v0 = vld [vmem:[#allocation2] sm:$0xff]  ;;  %v84_v1 = vld [vmem:[#allocation2 + $0x8] sm:$0xff] }
  0x47   :  { %s194_s23 = sld [smem:[#allocation6 + $0x80]]  ;;  %s196_s26 = sld [smem:[#allocation6 + $0x81]] }
  0x48   :  { %s391_s24 = sld [smem:[#allocation7]]  ;;  %s393_s27 = sld [smem:[#allocation7 + $0x1]] }
  0x49   :  { %s198_s28 = sld [smem:[#allocation6 + $0x2]]  ;;  %s201_s30 = sld [smem:[#allocation6 + $0x3]] }
  0x4a   :  { %s199_s2 = sld [smem:[#allocation6 + $0x82]]  ;;  %s397_s6 = sld [smem:[#allocation6 + $0x83]] }
  0x4b   :  { %s395_s29 = sld [smem:[#allocation7 + $0x2]]  ;;  %s399_s9 = sld [smem:[#allocation7 + $0x3]] }
  0x4c   :  { %v86_v2 = vstv %s85_s4  ;;  %s401_s10 = sld [smem:[#allocation9]]  ;;  %v97_v6 = vstv %s195_s25  ;;  %s411_s14 = sld [smem:[#allocation9 + $0x1]] }
  0x4d   :  { %v89_v3 = vstv %s194_s23  ;;  %s403_s11 = sld [smem:[#allocation9 + $0x80]]  ;;  %v87_v4 = vmul.f32 %v86_v2, %v83_v0  ;;  %v98_v8 = vmul.f32 %v97_v6, %v83_v0  ;;  %v100_v9 = vstv %s196_s26  ;;  %s413_s15 = sld [smem:[#allocation9 + $0x81]] }
  0x4e   :  { %v90_v5 = vmul.f32 %v89_v3, %v84_v1  ;;  %s405_s12 = sld [smem:[#allocation9 + $0x100]]  ;;  %v93_v7 = vstv %s391_s24  ;;  %v104_v10 = vstv %s393_s27  ;;  %v101_v12 = vmul.f32 %v100_v9, %v84_v1  ;;  %s415_s16 = sld [smem:[#allocation9 + $0x101]] }
  0x4f   :  { %s409_s13 = sld [smem:[#allocation9 + $0x180]]  ;;  %v108_v13 = vstv %s198_s28  ;;  %v119_v18 = vstv %s201_s30  ;;  %s418_s17 = sld [smem:[#allocation9 + $0x181]] }
  0x50   :  { %v91_v11 = vadd.f32 %v90_v5, %v87_v4  ;;  %v111_v14 = vstv %s199_s2  ;;  %v109_v15 = vmul.f32 %v108_v13, %v83_v0  ;;  %v102_v20 = vadd.f32 %v101_v12, %v98_v8  ;;  %s144_s18 = sld [smem:[#allocation10]]  ;;  %s211_s0 = sld [smem:[#allocation10 + $0x1]] }
  0x51   :  { %v112_v16 = vmul.f32 %v111_v14, %v84_v1  ;;  %v115_v17 = vstv %s395_s29  ;;  %v120_v21 = vmul.f32 %v119_v18, %v83_v0  ;;  %v122_v22 = vstv %s397_s6  ;;  %s333_s1 = smov [#allocation12]  }
  0x52   :  { %v94_v19 = vadd.f32 %v93_v7, %v91_v11  ;;  %v123_v24 = vmul.f32 %v122_v22, %v84_v1  ;;  %v130_v25 = vstv %s401_s10  ;;  %v105_v27 = vadd.f32 %v104_v10, %v102_v20  ;;  %s179_s3 = sshll.u32 %s333_s1, 4  ;;  %s180_s3 = int_to_ptr.vmem [resolvable:$true] %s179_s3 }
  0x53   :  { %v113_v23 = vadd.f32 %v112_v16, %v109_v15  ;;  %v126_v28 = vstv %s399_s9  ;;  %v133_v31 = vstv %s403_s11  ;;  %v148_v35 = vstv %s411_s14  ;;  %s294_s19 = scalar_lea.vmem %s180_s3, 256  ;;  %p299_p1 = scmp.lt.s32.totalorder %s180_s3, %s180_s3 }
  0x54   :  { %v95_v26 = vmax.f32 %v94_v19, 0.0  ;;  %v124_v30 = vadd.f32 %v123_v24, %v120_v21  ;;  %v137_v32 = vstv %s405_s12  ;;  %v106_v33 = vmax.f32 %v105_v27, 0.0  ;;  %p295_p0 = scmp.ne.s32.totalorder %s180_s3, %s294_s19  ;;  %p300_p2 = scmp.lt.s32.totalorder %s294_s19, %s294_s19 }
  0x55   :  { %v116_v29 = vadd.f32 %v115_v17, %v113_v23  ;;  %v151_v36 = vstv %s413_s15  ;;  %v155_v40 = vstv %s415_s16  ;;  %v141_v42 = vstv %s409_s13 }
  0x56   :  { %v131_v34 = vmul.f32 %v130_v25, %v95_v26  ;;  %v127_v38 = vadd.f32 %v126_v28, %v124_v30  ;;  %v149_v39 = vmul.f32 %v148_v35, %v95_v26  ;;  %v134_v41 = vmul.f32 %v133_v31, %v106_v33  ;;  %p301_p3 = por %p300_p2, %p299_p1 }
  0x57   :  { %v117_v37 = vmax.f32 %v116_v29, 0.0  ;;  %v152_v43 = vmul.f32 %v151_v36, %v106_v33  ;;  %v159_v44 = vstv %s418_s17  ;;  %v145_v54 = vstv %s144_s18 }
  0x58   :  { %v128_v45 = vmax.f32 %v127_v38, 0.0  ;;  %v135_v48 = vadd.f32 %v134_v41, %v131_v34  ;;  %v163_v55 = vstv %s211_s0  ;;  %p302_p4 = pnand %p301_p3, %p295_p0 }
  0x59   :  { %v138_v46 = vmul.f32 %v137_v32, %v117_v37  ;;  %v156_v47 = vmul.f32 %v155_v40, %v117_v37  ;;  %v153_v49 = vadd.f32 %v152_v43, %v149_v39 }
  0x5a   :  { %v142_v50 = vmul.f32 %v141_v42, %v128_v45  ;;  %v160_v51 = vmul.f32 %v159_v44, %v128_v45 }
  0x5b   :  { %v139_v52 = vadd.f32 %v138_v46, %v135_v48  ;;  %v157_v53 = vadd.f32 %v156_v47, %v153_v49 }
  0x5d   :  { %v143_v56 = vadd.f32 %v142_v50, %v139_v52  ;;  %v161_v57 = vadd.f32 %v160_v51, %v157_v53 }
  0x5f   :  { %v146_v58 = vadd.f32 %v145_v54, %v143_v56  ;;  %v164_v59 = vadd.f32 %v163_v55, %v161_v57 }
  0x61   :  { %v165_v60 = vsub.f32 %v164_v59, %v146_v58 }
  0x63   :  { %v166_v61 = vmul.f32 1.442695, %v165_v60 }
  0x65   :  { %220 = vpow2.f32 %v166_v61 }
  0x6f   :  { %v221_v62 = vpop.eup %220 }
  0x70   :  { %v168_v63 = vadd.f32 1.0, %v221_v62 }
  0x72   :  { %222 = vrcp.f32 %v168_v63 }
  0x7c   :  { %v223_v0 = vpop.eup %222 }
  0x7d   :  { %171 = vst [vmem:[#allocation12] sm:$0xff] %v223_v0  ;;  %v172_v1 = vsub.f32 1.0, %v223_v0 }
  0x7f   :  { %173 = vst [vmem:[#allocation12 + $0x8] sm:$0xff] %v172_v1 }
  0x80   :  { %305 = shalt.err (!%p302_p4)
}
  0x81   :  { %s306_s22 = scalar_lea.hbm %s450_s5, 256 }
  0x82   :  { %p307_p5 = scmp.ne.s32.totalorder %s450_s5, %s306_s22  ;;  %p310_p6 = scmp.lt.u32.totalorder %s306_s22, %s450_s5 }
  0x84   :  { %p312_p7 = pnand %p310_p6, %p307_p5 }
  0x86   :  { %315 = shalt.err (!%p312_p7)
}
  0x87   :  { %185 = dma.vmem_to_hbm [thread:$0]  %s180_s3, 256, %s450_s5, [#allocation4], %s328_s7, %s328_s7, %s329_s8  }
  0x88   :  { %324 = dma.done.wait [#allocation4], 256  }
  0x89   :  { %325 = vsyncadd [#allocation4], 4294967040 }
  0x8a   :  { %189 = vsyncpa [#allocation3], 1 }
  0x8b   :  { %190 = vsyncpa [#allocation4], 1 }
  0x8c   :  { %191 = vsyncpa [#allocation5], 1 }
  0x8d   :  { %192 = vsyncpa [#allocation8], 1 }
  0x8e   :  { %193 = vsyncpa [#allocation11], 1 }

</bundles_post_ra>
